<compile_context>
chip_gen: v5e
topology: v5e:2x2
jax: 0.10.0
libtpu: 0.0.40
codegen_flags: <defaults>
</compile_context>

<pallas_src>
import functools

import jax
import jax.numpy as jnp
import numpy as np
from jax.experimental import pallas as pl
from jax.experimental.pallas import tpu as pltpu

LANE = 128      # lane width / feature-dim padding target
TILE_M = 128    # node-row tile (grid axis; "parallel" -> megacore/v7x dual-TC)
VMEM_LIMIT = 48 * 1024 * 1024   # explicit scoped-VMEM hint, fits all generations


def _round_up(v, m):
    return (v + m - 1) // m * m


def _pad2(a, rows, cols):
    r, c = a.shape
    return jnp.pad(a, ((0, rows - r), (0, cols - c)))


# ----------------------------- GIN layer kernel ---------------------------- #
def _gin_layer_kernel(eps_ref, a_ref, hfull_ref, hrow_ref,
                      wa_ref, ba_ref, wb_ref, bb_ref, out_ref):
    """One GIN conv for a TILE_M-row tile of nodes.

    aggr = A_tile @ h                (bf16 operands, f32 MXU accumulation)
    z    = (1 + eps) * h_tile + aggr
    out  = relu(relu(z @ Wa + ba) @ Wb + bb)
    (The original module's extra x.relu() after the MLP is redundant.)
    """
    eps = eps_ref[0, 0]
    aggr = jnp.dot(a_ref[...], hfull_ref[...],
                   preferred_element_type=jnp.float32)
    z = (1.0 + eps) * hrow_ref[...] + aggr
    z = jnp.maximum(
        jnp.dot(z, wa_ref[...], preferred_element_type=jnp.float32) + ba_ref[...],
        0.0)
    out_ref[...] = jnp.maximum(
        jnp.dot(z, wb_ref[...], preferred_element_type=jnp.float32) + bb_ref[...],
        0.0)


def _gin_layer(a_bf16, h_f32, wa, ba, wb, bb, eps, *, tile_m=TILE_M):
    n_pad, f_in = h_f32.shape
    f_out = wb.shape[1]
    grid = (n_pad // tile_m,)

    h_bf16 = h_f32.astype(jnp.bfloat16)          # bf16 copy only for the aggregation
    eps_arr = jnp.reshape(eps.astype(jnp.float32), (1, 1))

    smem = pl.BlockSpec(memory_space=pltpu.MemorySpace.SMEM)
    return pl.pallas_call(
        _gin_layer_kernel,
        out_shape=jax.ShapeDtypeStruct((n_pad, f_out), jnp.float32),
        grid=grid,
        in_specs=[
            smem,                                               # eps (SMEM scalar)
            pl.BlockSpec((tile_m, n_pad), lambda i: (i, 0)),    # A row tile (bf16, streamed)
            pl.BlockSpec((n_pad, f_in), lambda i: (0, 0)),      # full h (bf16, resident)
            pl.BlockSpec((tile_m, f_in), lambda i: (i, 0)),     # h row tile (f32)
            pl.BlockSpec((f_in, f_out), lambda i: (0, 0)),      # Wa (resident)
            pl.BlockSpec((1, f_out), lambda i: (0, 0)),         # ba
            pl.BlockSpec((f_out, f_out), lambda i: (0, 0)),     # Wb (resident)
            pl.BlockSpec((1, f_out), lambda i: (0, 0)),         # bb
        ],
        out_specs=pl.BlockSpec((tile_m, f_out), lambda i: (i, 0)),
        compiler_params=pltpu.CompilerParams(
            dimension_semantics=("parallel",),
            vmem_limit_bytes=VMEM_LIMIT,
        ),
    )(eps_arr, a_bf16, h_bf16, h_f32, wa, ba, wb, bb)


# ----------------------- global mean pool + classifier --------------------- #
def _pool_classify_kernel(p_ref, h_ref, wc_ref, bc_ref, out_ref):
    pooled = jnp.dot(p_ref[...], h_ref[...], preferred_element_type=jnp.float32)
    out_ref[...] = (
        jnp.dot(pooled, wc_ref[...], preferred_element_type=jnp.float32) + bc_ref[...]
    )


def _pool_classify(pool, h, wc, bc):
    g_pad = pool.shape[0]
    c_pad = wc.shape[1]
    vmem = pl.BlockSpec(memory_space=pltpu.MemorySpace.VMEM)
    return pl.pallas_call(
        _pool_classify_kernel,
        out_shape=jax.ShapeDtypeStruct((g_pad, c_pad), jnp.float32),
        in_specs=[vmem, vmem, vmem, vmem],
        out_specs=vmem,
        compiler_params=pltpu.CompilerParams(vmem_limit_bytes=VMEM_LIMIT),
    )(pool, h, wc, bc)


# --------------------------------- wrapper --------------------------------- #
@functools.partial(jax.jit, static_argnames=("num_graphs", "tile_m"))
def graph_net_forward(x, edge_index, batch, params, num_graphs, *, tile_m=TILE_M):
    """x: (N, in_dim) f32; edge_index: (2, E) int32 [src; dst]; batch: (N,) int32."""
    n, in_dim = x.shape
    hidden = params["w1b"].shape[1]
    num_classes = params["wc"].shape[1]

    n_pad = _round_up(max(n, tile_m), tile_m)
    fin_pad = _round_up(in_dim, LANE)
    h_pad = _round_up(hidden, LANE)
    c_pad = _round_up(num_classes, LANE)
    g_pad = _round_up(max(num_graphs, 8), 8)

    # dense scatter-add adjacency A[dst, src] += 1, self-loops removed; bf16 is exact
    # for integer edge counts <= 256.  Padded node rows/cols stay exactly zero.
    # TODO(synk): for realistic sparse graphs, replace the dense A @ h aggregation
    # with a CSR segment-sum kernel (scalar-prefetched row offsets) instead of O(N^2).
    src, dst = edge_index[0], edge_index[1]
    edge_val = (src != dst).astype(jnp.float32)
    adj = jnp.zeros((n_pad, n_pad), jnp.float32).at[dst, src].add(edge_val)
    adj = adj.astype(jnp.bfloat16)

    # global mean-pool matrix (f32: 1/count is not bf16-exact); padded cols zero.
    one_hot = (batch[None, :] == jnp.arange(num_graphs)[:, None]).astype(jnp.float32)
    counts = jnp.maximum(one_hot.sum(axis=1, keepdims=True), 1.0)
    pool = jnp.zeros((g_pad, n_pad), jnp.float32).at[:num_graphs, :n].set(one_hot / counts)

    # lane-dense (128-multiple) padding of features / weights / biases.
    x_p = _pad2(x.astype(jnp.float32), n_pad, fin_pad)
    w1a = _pad2(params["w1a"], fin_pad, h_pad); b1a = _pad2(params["b1a"], 1, h_pad)
    w1b = _pad2(params["w1b"], h_pad, h_pad);   b1b = _pad2(params["b1b"], 1, h_pad)
    w2a = _pad2(params["w2a"], h_pad, h_pad);   b2a = _pad2(params["b2a"], 1, h_pad)
    w2b = _pad2(params["w2b"], h_pad, h_pad);   b2b = _pad2(params["b2b"], 1, h_pad)
    wc = _pad2(params["wc"], h_pad, c_pad);     bc = _pad2(params["bc"], 1, c_pad)

    h = _gin_layer(adj, x_p, w1a, b1a, w1b, b1b, params["eps1"], tile_m=tile_m)
    h = _gin_layer(adj, h,   w2a, b2a, w2b, b2b, params["eps2"], tile_m=tile_m)
    h = _gin_layer(adj, h,   w2a, b2a, w2b, b2b, params["eps3"], tile_m=tile_m)
    out = _pool_classify(pool, h, wc, bc)
    return out[:num_graphs, :num_classes]


# ------------------------- pure-JAX reference ------------------------------ #
def graph_net_reference(x, edge_index, batch, params, num_graphs):
    """Mirrors the kernel's numerics (bf16 A / bf16 h for aggregation, f32 elsewhere)."""
    n = x.shape[0]
    src, dst = edge_index[0], edge_index[1]
    edge_val = (src != dst).astype(jnp.float32)
    adj = jnp.zeros((n, n), jnp.float32).at[dst, src].add(edge_val).astype(jnp.bfloat16)
    one_hot = (batch[None, :] == jnp.arange(num_graphs)[:, None]).astype(jnp.float32)
    pool = one_hot / jnp.maximum(one_hot.sum(axis=1, keepdims=True), 1.0)

    def gin(h, wa, ba, wb, bb, eps):
        aggr = jnp.dot(adj, h.astype(jnp.bfloat16), preferred_element_type=jnp.float32)
        z = (1.0 + eps) * h + aggr
        z = jax.nn.relu(z @ wa + ba)
        return jax.nn.relu(z @ wb + bb)          # extra outer relu is a no-op

    h = gin(x, params["w1a"], params["b1a"], params["w1b"], params["b1b"], params["eps1"])
    h = gin(h, params["w2a"], params["b2a"], params["w2b"], params["b2b"], params["eps2"])
    h = gin(h, params["w2a"], params["b2a"], params["w2b"], params["b2b"], params["eps3"])
    return (pool @ h) @ params["wc"] + params["bc"]


# ----------------------------------- main ----------------------------------- #
if __name__ == "__main__":
    N = 16            # nodes
    IN_DIM = 8
    HIDDEN = 32
    NUM_CLASSES = 4
    NUM_GRAPHS = 2
    E = 40            # edges

    key = jax.random.PRNGKey(0)
    ks = jax.random.split(key, 16)

    x = jax.random.normal(ks[0], (N, IN_DIM), jnp.float32)
    src = jax.random.randint(ks[1], (E,), 0, N, jnp.int32)
    dst = jax.random.randint(ks[2], (E,), 0, N, jnp.int32)
    edge_index = jnp.stack([src, dst], axis=0)
    batch = jnp.concatenate(
        [jnp.zeros((N // 2,), jnp.int32), jnp.ones((N - N // 2,), jnp.int32)]
    )

    def init_linear(k, fan_in, fan_out):
        kw, kb = jax.random.split(k)
        w = jax.random.normal(kw, (fan_in, fan_out), jnp.float32) * 0.1
        b = jax.random.normal(kb, (1, fan_out), jnp.float32) * 0.1
        return w, b

    w1a, b1a = init_linear(ks[3], IN_DIM, HIDDEN)     # mlp_input.first_fc
    w1b, b1b = init_linear(ks[4], HIDDEN, HIDDEN)     # mlp_input.second_fc
    w2a, b2a = init_linear(ks[5], HIDDEN, HIDDEN)     # mlp_hidden.first_fc  (shared)
    w2b, b2b = init_linear(ks[6], HIDDEN, HIDDEN)     # mlp_hidden.second_fc (shared)
    wc, bc = init_linear(ks[7], HIDDEN, NUM_CLASSES)  # class_layer

    params = dict(
        w1a=w1a, b1a=b1a, w1b=w1b, b1b=b1b,
        w2a=w2a, b2a=b2a, w2b=w2b, b2b=b2b,
        wc=wc, bc=bc,
        eps1=jnp.float32(0.0), eps2=jnp.float32(0.0), eps3=jnp.float32(0.0),
    )

    out = graph_net_forward(x, edge_index, batch, params, NUM_GRAPHS)
    out = jax.block_until_ready(out)

    ref = graph_net_reference(x, edge_index, batch, params, NUM_GRAPHS)
    np.testing.assert_allclose(np.asarray(out), np.asarray(ref), rtol=1e-4, atol=1e-4)

    print("KERNEL_OK")
</pallas_src>

<mosaic_0001>
module attributes {stable_mosaic.version = 11 : i64} {
  func.func @_gin_layer_kernel(%arg0: i32, %arg1: memref<1x1xf32, #tpu.memory_space<smem>>, %arg2: memref<128x128xbf16, #tpu.memory_space<vmem>>, %arg3: memref<128x128xbf16, #tpu.memory_space<vmem>>, %arg4: memref<128x128xf32, #tpu.memory_space<vmem>>, %arg5: memref<128x128xf32, #tpu.memory_space<vmem>>, %arg6: memref<1x128xf32, #tpu.memory_space<vmem>>, %arg7: memref<128x128xf32, #tpu.memory_space<vmem>>, %arg8: memref<1x128xf32, #tpu.memory_space<vmem>>, %arg9: memref<128x128xf32, #tpu.memory_space<vmem>>) attributes {dimension_semantics = [#tpu.dimension_semantics<parallel>], iteration_bounds = array<i64: 1>, scalar_prefetch = 0 : i64, scratch_operands = 0 : i64, tpu.core_type = #tpu.core_type<tc>, window_params = [{transform_indices = @transform_0, window_bounds = array<i64: 1, 1>}, {transform_indices = @transform_1, window_bounds = array<i64: 128, 128>}, {pipeline_mode = #tpu.pipeline_mode<synchronous>, transform_indices = @transform_2, window_bounds = array<i64: 128, 128>}, {transform_indices = @transform_3, window_bounds = array<i64: 128, 128>}, {pipeline_mode = #tpu.pipeline_mode<synchronous>, transform_indices = @transform_4, window_bounds = array<i64: 128, 128>}, {pipeline_mode = #tpu.pipeline_mode<synchronous>, transform_indices = @transform_5, window_bounds = array<i64: 1, 128>}, {pipeline_mode = #tpu.pipeline_mode<synchronous>, transform_indices = @transform_6, window_bounds = array<i64: 128, 128>}, {pipeline_mode = #tpu.pipeline_mode<synchronous>, transform_indices = @transform_7, window_bounds = array<i64: 1, 128>}, {transform_indices = @transform_8, window_bounds = array<i64: 128, 128>}]} {
    %c0 = arith.constant 0 : index
    %c0_0 = arith.constant 0 : index
    %0 = memref.load %arg1[%c0, %c0_0] : memref<1x1xf32, #tpu.memory_space<smem>>
    %c0_1 = arith.constant 0 : index
    %c0_2 = arith.constant 0 : index
    %1 = vector.load %arg2[%c0_1, %c0_2] : memref<128x128xbf16, #tpu.memory_space<vmem>>, vector<128x128xbf16>
    %c0_3 = arith.constant 0 : index
    %c0_4 = arith.constant 0 : index
    %2 = vector.load %arg3[%c0_3, %c0_4] : memref<128x128xbf16, #tpu.memory_space<vmem>>, vector<128x128xbf16>
    %cst = arith.constant dense<0.000000e+00> : vector<128x128xf32>
    %3 = tpu.matmul %1, %2, %cst {dimension_numbers = #tpu.dot_dimension_numbers<[1], [0], [0], [1], [0, 0, 1, 1], [], []>} : vector<128x128xbf16>, vector<128x128xbf16>, vector<128x128xf32> -> vector<128x128xf32>
    %cst_5 = arith.constant 1.000000e+00 : f32
    %4 = arith.addf %cst_5, %0 : f32
    %c0_6 = arith.constant 0 : index
    %c0_7 = arith.constant 0 : index
    %5 = vector.load %arg4[%c0_6, %c0_7] : memref<128x128xf32, #tpu.memory_space<vmem>>, vector<128x128xf32>
    %6 = vector.broadcast %4 : f32 to vector<128x128xf32>
    %7 = arith.mulf %6, %5 : vector<128x128xf32>
    %8 = arith.addf %7, %3 : vector<128x128xf32>
    %c0_8 = arith.constant 0 : index
    %c0_9 = arith.constant 0 : index
    %9 = vector.load %arg5[%c0_8, %c0_9] : memref<128x128xf32, #tpu.memory_space<vmem>>, vector<128x128xf32>
    %cst_10 = arith.constant dense<0.000000e+00> : vector<128x128xf32>
    %10 = tpu.matmul %8, %9, %cst_10 {dimension_numbers = #tpu.dot_dimension_numbers<[1], [0], [0], [1], [0, 0, 1, 1], [], []>} : vector<128x128xf32>, vector<128x128xf32>, vector<128x128xf32> -> vector<128x128xf32>
    %c0_11 = arith.constant 0 : index
    %c0_12 = arith.constant 0 : index
    %11 = vector.load %arg6[%c0_11, %c0_12] : memref<1x128xf32, #tpu.memory_space<vmem>>, vector<1x128xf32>
    %12 = vector.broadcast %11 : vector<1x128xf32> to vector<128x128xf32>
    %13 = arith.addf %10, %12 : vector<128x128xf32>
    %cst_13 = arith.constant 0.000000e+00 : f32
    %14 = vector.broadcast %cst_13 : f32 to vector<128x128xf32>
    %15 = arith.maximumf %13, %14 : vector<128x128xf32>
    %c0_14 = arith.constant 0 : index
    %c0_15 = arith.constant 0 : index
    %16 = vector.load %arg7[%c0_14, %c0_15] : memref<128x128xf32, #tpu.memory_space<vmem>>, vector<128x128xf32>
    %cst_16 = arith.constant dense<0.000000e+00> : vector<128x128xf32>
    %17 = tpu.matmul %15, %16, %cst_16 {dimension_numbers = #tpu.dot_dimension_numbers<[1], [0], [0], [1], [0, 0, 1, 1], [], []>} : vector<128x128xf32>, vector<128x128xf32>, vector<128x128xf32> -> vector<128x128xf32>
    %c0_17 = arith.constant 0 : index
    %c0_18 = arith.constant 0 : index
    %18 = vector.load %arg8[%c0_17, %c0_18] : memref<1x128xf32, #tpu.memory_space<vmem>>, vector<1x128xf32>
    %19 = vector.broadcast %18 : vector<1x128xf32> to vector<128x128xf32>
    %20 = arith.addf %17, %19 : vector<128x128xf32>
    %cst_19 = arith.constant 0.000000e+00 : f32
    %21 = vector.broadcast %cst_19 : f32 to vector<128x128xf32>
    %22 = arith.maximumf %20, %21 : vector<128x128xf32>
    %c0_20 = arith.constant 0 : index
    %c0_21 = arith.constant 0 : index
    %23 = vector.load %arg9[%c0_20, %c0_21] : memref<128x128xf32, #tpu.memory_space<vmem>>, vector<128x128xf32>
    tpu.vector_store %arg9[%c0_20, %c0_21], %22 {strides = array<i32>} : memref<128x128xf32, #tpu.memory_space<vmem>>, vector<128x128xf32>,
    return
  }
  func.func @transform_0(%arg0: i32) -> (i32, i32) {
    %c0_i32 = arith.constant 0 : i32
    %c0_i32_0 = arith.constant 0 : i32
    %c0_i32_1 = arith.constant 0 : i32
    return %c0_i32, %c0_i32_0 : i32, i32
  }
  func.func @transform_1(%arg0: i32) -> (i32, i32) {
    %c0_i32 = arith.constant 0 : i32
    %c0_i32_0 = arith.constant 0 : i32
    return %arg0, %c0_i32 : i32, i32
  }
  func.func @transform_2(%arg0: i32) -> (i32, i32) {
    %c0_i32 = arith.constant 0 : i32
    %c0_i32_0 = arith.constant 0 : i32
    %c0_i32_1 = arith.constant 0 : i32
    return %c0_i32, %c0_i32_0 : i32, i32
  }
  func.func @transform_3(%arg0: i32) -> (i32, i32) {
    %c0_i32 = arith.constant 0 : i32
    %c0_i32_0 = arith.constant 0 : i32
    return %arg0, %c0_i32 : i32, i32
  }
  func.func @transform_4(%arg0: i32) -> (i32, i32) {
    %c0_i32 = arith.constant 0 : i32
    %c0_i32_0 = arith.constant 0 : i32
    %c0_i32_1 = arith.constant 0 : i32
    return %c0_i32, %c0_i32_0 : i32, i32
  }
  func.func @transform_5(%arg0: i32) -> (i32, i32) {
    %c0_i32 = arith.constant 0 : i32
    %c0_i32_0 = arith.constant 0 : i32
    %c0_i32_1 = arith.constant 0 : i32
    return %c0_i32, %c0_i32_0 : i32, i32
  }
  func.func @transform_6(%arg0: i32) -> (i32, i32) {
    %c0_i32 = arith.constant 0 : i32
    %c0_i32_0 = arith.constant 0 : i32
    %c0_i32_1 = arith.constant 0 : i32
    return %c0_i32, %c0_i32_0 : i32, i32
  }
  func.func @transform_7(%arg0: i32) -> (i32, i32) {
    %c0_i32 = arith.constant 0 : i32
    %c0_i32_0 = arith.constant 0 : i32
    %c0_i32_1 = arith.constant 0 : i32
    return %c0_i32, %c0_i32_0 : i32, i32
  }
  func.func @transform_8(%arg0: i32) -> (i32, i32) {
    %c0_i32 = arith.constant 0 : i32
    %c0_i32_0 = arith.constant 0 : i32
    return %arg0, %c0_i32 : i32, i32
  }
}

module attributes {stable_mosaic.version = 11 : i64} {
  func.func @_pool_classify_kernel(%arg0: memref<8x128xf32, #tpu.memory_space<vmem>>, %arg1: memref<128x128xf32, #tpu.memory_space<vmem>>, %arg2: memref<128x128xf32, #tpu.memory_space<vmem>>, %arg3: memref<1x128xf32, #tpu.memory_space<vmem>>, %arg4: memref<8x128xf32, #tpu.memory_space<vmem>>) attributes {dimension_semantics = [], scalar_prefetch = 0 : i64, scratch_operands = 0 : i64, tpu.core_type = #tpu.core_type<tc>} {
    %c0 = arith.constant 0 : index
    %c0_0 = arith.constant 0 : index
    %0 = vector.load %arg0[%c0, %c0_0] : memref<8x128xf32, #tpu.memory_space<vmem>>, vector<8x128xf32>
    %c0_1 = arith.constant 0 : index
    %c0_2 = arith.constant 0 : index
    %1 = vector.load %arg1[%c0_1, %c0_2] : memref<128x128xf32, #tpu.memory_space<vmem>>, vector<128x128xf32>
    %cst = arith.constant dense<0.000000e+00> : vector<8x128xf32>
    %2 = tpu.matmul %0, %1, %cst {dimension_numbers = #tpu.dot_dimension_numbers<[1], [0], [0], [1], [0, 0, 1, 1], [], []>} : vector<8x128xf32>, vector<128x128xf32>, vector<8x128xf32> -> vector<8x128xf32>
    %c0_3 = arith.constant 0 : index
    %c0_4 = arith.constant 0 : index
    %3 = vector.load %arg2[%c0_3, %c0_4] : memref<128x128xf32, #tpu.memory_space<vmem>>, vector<128x128xf32>
    %cst_5 = arith.constant dense<0.000000e+00> : vector<8x128xf32>
    %4 = tpu.matmul %2, %3, %cst_5 {dimension_numbers = #tpu.dot_dimension_numbers<[1], [0], [0], [1], [0, 0, 1, 1], [], []>} : vector<8x128xf32>, vector<128x128xf32>, vector<8x128xf32> -> vector<8x128xf32>
    %c0_6 = arith.constant 0 : index
    %c0_7 = arith.constant 0 : index
    %5 = vector.load %arg3[%c0_6, %c0_7] : memref<1x128xf32, #tpu.memory_space<vmem>>, vector<1x128xf32>
    %6 = vector.broadcast %5 : vector<1x128xf32> to vector<8x128xf32>
    %7 = arith.addf %4, %6 : vector<8x128xf32>
    %c0_8 = arith.constant 0 : index
    %c0_9 = arith.constant 0 : index
    %8 = vector.load %arg4[%c0_8, %c0_9] : memref<8x128xf32, #tpu.memory_space<vmem>>, vector<8x128xf32>
    tpu.vector_store %arg4[%c0_8, %c0_9], %7 {strides = array<i32>} : memref<8x128xf32, #tpu.memory_space<vmem>>, vector<8x128xf32>,
    return
  }
}

</mosaic_0001>

<bundles_post_ra>
// kernel: graph_net_forward.7
= control target key start
LH: loop header
LB: loop body
LE: loop exit
PB: predicated region body
PF: predicated region fallthrough
CT: control target
= control target key end

     0   :  { %s230_s1 = inlined_call_operand.vmem [shape: f32[128,128], index: 1, kind: input, shape index: {}]   ;;  %s231_s2 = inlined_call_operand.vmem [shape: f32[128,128], index: 2, kind: input, shape index: {}]   ;;  %s232_s0 = inlined_call_operand.vmem [shape: f32[8,128], index: 0, kind: input, shape index: {}]   ;;  %s233_s3 = inlined_call_operand.vmem [shape: f32[1,128], index: 3, kind: input, shape index: {}]   ;;  %s234_s4 = inlined_call_operand.vmem [shape: f32[8,128], index: 4, kind: output, shape index: {}]  }
   0x1   :  { %v33_v0 = vld [vmem:[%s230_s1 + $0x78] sm:$0xff]  ;;  %v32_v1 = vld [vmem:[%s230_s1 + $0x70] sm:$0xff]  ;;  %v31_v2 = vld [vmem:[%s230_s1 + $0x68] sm:$0xff] }
   0x2   :  { %34 = vmatpush.msra.mxu0 %v33_v0  ;;  %v30_v3 = vld [vmem:[%s230_s1 + $0x60] sm:$0xff]  ;;  %v69_v4 = vld [vmem:[%s231_s2 + $0x78] sm:$0xff]  ;;  %v68_v6 = vld [vmem:[%s231_s2 + $0x70] sm:$0xff] }
   0x3   :  { %v29_v5 = vld [vmem:[%s230_s1 + $0x58] sm:$0xff]  ;;  %74 = vmatpush.msra.mxu1 %v69_v4  ;;  %v67_v7 = vld [vmem:[%s231_s2 + $0x68] sm:$0xff]  ;;  %v28_v8 = vld [vmem:[%s230_s1 + $0x50] sm:$0xff] }
   0x4   :  { %35 = vmatpush.msra.mxu0 %v32_v1  ;;  %v66_v9 = vld [vmem:[%s231_s2 + $0x60] sm:$0xff]  ;;  %v27_v10 = vld [vmem:[%s230_s1 + $0x48] sm:$0xff]  ;;  %v65_v11 = vld [vmem:[%s231_s2 + $0x58] sm:$0xff] }
   0x5   :  { %75 = vmatpush.msra.mxu1 %v68_v6  ;;  %v26_v12 = vld [vmem:[%s230_s1 + $0x40] sm:$0xff]  ;;  %v64_v13 = vld [vmem:[%s231_s2 + $0x50] sm:$0xff]  ;;  %v25_v14 = vld [vmem:[%s230_s1 + $0x38] sm:$0xff] }
   0x6   :  { %36 = vmatpush.msra.mxu0 %v31_v2  ;;  %v63_v15 = vld [vmem:[%s231_s2 + $0x48] sm:$0xff]  ;;  %v24_v16 = vld [vmem:[%s230_s1 + $0x30] sm:$0xff]  ;;  %v62_v17 = vld [vmem:[%s231_s2 + $0x40] sm:$0xff] }
   0x7   :  { %76 = vmatpush.msra.mxu1 %v67_v7  ;;  %v23_v18 = vld [vmem:[%s230_s1 + $0x28] sm:$0xff]  ;;  %v61_v19 = vld [vmem:[%s231_s2 + $0x38] sm:$0xff]  ;;  %v22_v20 = vld [vmem:[%s230_s1 + $0x20] sm:$0xff] }
   0x8   :  { %37 = vmatpush.msra.mxu0 %v30_v3  ;;  %v60_v21 = vld [vmem:[%s231_s2 + $0x30] sm:$0xff]  ;;  %v21_v22 = vld [vmem:[%s230_s1 + $0x18] sm:$0xff]  ;;  %v59_v23 = vld [vmem:[%s231_s2 + $0x28] sm:$0xff] }
   0x9   :  { %77 = vmatpush.msra.mxu1 %v66_v9  ;;  %v20_v24 = vld [vmem:[%s230_s1 + $0x10] sm:$0xff]  ;;  %v58_v25 = vld [vmem:[%s231_s2 + $0x20] sm:$0xff]  ;;  %v19_v26 = vld [vmem:[%s230_s1 + $0x8] sm:$0xff] }
   0xa   :  { %38 = vmatpush.msra.mxu0 %v29_v5  ;;  %v57_v27 = vld [vmem:[%s231_s2 + $0x18] sm:$0xff]  ;;  %v18_v28 = vld [vmem:[%s230_s1] sm:$0xff]  ;;  %v56_v30 = vld [vmem:[%s231_s2 + $0x10] sm:$0xff] }
   0xb   :  { %78 = vmatpush.msra.mxu1 %v65_v11  ;;  %v17_v29 = vld [vmem:[%s232_s0] sm:$0xff]  ;;  %v55_v31 = vld [vmem:[%s231_s2 + $0x8] sm:$0xff] }
   0xc   :  { %39 = vmatpush.msra.mxu0 %v28_v8  ;;  %v54_v32 = vld [vmem:[%s231_s2] sm:$0xff] }
   0xd   :  { %79 = vmatpush.msra.mxu1 %v64_v13  ;;  %v99_v34 = vld [vmem:[%s233_s3] ss:$0 sm:$0xff] }
   0xe   :  { %40 = vmatpush.msra.mxu0 %v27_v10 }
   0xf   :  { %80 = vmatpush.msra.mxu1 %v63_v15 }
  0x10   :  { %41 = vmatpush.msra.mxu0 %v26_v12 }
  0x11   :  { %81 = vmatpush.msra.mxu1 %v62_v17 }
  0x12   :  { %42 = vmatpush.msra.mxu0 %v25_v14 }
  0x13   :  { %82 = vmatpush.msra.mxu1 %v61_v19 }
  0x14   :  { %43 = vmatpush.msra.mxu0 %v24_v16 }
  0x15   :  { %83 = vmatpush.msra.mxu1 %v60_v21 }
  0x16   :  { %44 = vmatpush.msra.mxu0 %v23_v18 }
  0x17   :  { %84 = vmatpush.msra.mxu1 %v59_v23 }
  0x18   :  { %45 = vmatpush.msra.mxu0 %v22_v20 }
  0x19   :  { %85 = vmatpush.msra.mxu1 %v58_v25 }
  0x1a   :  { %46 = vmatpush.msra.mxu0 %v21_v22 }
  0x1b   :  { %86 = vmatpush.msra.mxu1 %v57_v27 }
  0x1c   :  { %47 = vmatpush.msra.mxu0 %v20_v24 }
  0x1d   :  { %87 = vmatpush.msra.mxu1 %v56_v30 }
  0x1e   :  { %48 = vmatpush.msra.mxu0 %v19_v26 }
  0x1f   :  { %88 = vmatpush.msra.mxu1 %v55_v31 }
  0x20   :  { %49 = vmatpush.msra.mxu0 %v18_v28 }
  0x21   :  { %50 = vmatmul.f32.vlgmr.msra.gmra.mxu0 %v17_v29  ;;  %89 = vmatpush.msra.mxu1 %v54_v32 }
  0x9e   :  { %v51_v33 = vpop.f32.mrf.mxu0 }
  0x9f   :  { %90 = vmatmul.f32.vlgmr.msra.gmra.mxu1 %v51_v33 }
 0x11c   :  { %v91_v35 = vpop.f32.mrf.mxu1 }
 0x11d   :  { %v92_v36 = vadd.f32 %v99_v34, %v91_v35 }
 0x11f   :  { %94 = vst [vmem:[%s234_s4] sm:$0xff] %v92_v36 }

// kernel: graph_net_forward.4
= control target key start
LH: loop header
LB: loop body
LE: loop exit
PB: predicated region body
PF: predicated region fallthrough
CT: control target
= control target key end

     0   :  { %s932_s2 = inlined_call_operand.vmem [shape: bf16[128,128], index: 2, kind: input, shape index: {}]   ;;  %s933_s1 = inlined_call_operand.vmem [shape: bf16[128,128], index: 1, kind: input, shape index: {}]   ;;  %s934_s4 = inlined_call_operand.vmem [shape: f32[128,128], index: 4, kind: input, shape index: {}]   ;;  %s935_s5 = inlined_call_operand.vmem [shape: f32[1,128], index: 5, kind: input, shape index: {}]   ;;  %s936_s0 = inlined_call_operand.<no memory space> [shape: f32[1,1], index: 0, kind: input, shape index: {}]   ;;  %s937_s3 = inlined_call_operand.vmem [shape: f32[128,128], index: 3, kind: input, shape index: {}]   ;;  %s938_s6 = inlined_call_operand.vmem [shape: f32[128,128], index: 6, kind: input, shape index: {}]   ;;  %s939_s7 = inlined_call_operand.vmem [shape: f32[1,128], index: 7, kind: input, shape index: {}]   ;;  %s940_s8 = inlined_call_operand.vmem [shape: f32[128,128], index: 8, kind: output, shape index: {}]  }
   0x1   :  { %v559_v0 = vld [vmem:[%s932_s2 + $0x38] sm:$0xff]  ;;  %v558_v1 = vld [vmem:[%s932_s2 + $0x30] sm:$0xff]  ;;  %v557_v2 = vld [vmem:[%s932_s2 + $0x28] sm:$0xff]  ;;  %s208_s25 = sadd.f32 1.0, %s936_s0 }
   0x2   :  { %159 = vmatpush.bf16.msra.mxu0 %v559_v0  ;;  %560 = vmatpush.bf16.msra.mxu3 %v559_v0  ;;  %v556_v3 = vld [vmem:[%s932_s2 + $0x20] sm:$0xff]  ;;  %v555_v4 = vld [vmem:[%s932_s2 + $0x18] sm:$0xff]  ;;  %v554_v5 = vld [vmem:[%s932_s2 + $0x10] sm:$0xff] }
   0x3   :  { %v553_v6 = vld [vmem:[%s932_s2 + $0x8] sm:$0xff]  ;;  %v552_v7 = vld [vmem:[%s932_s2] sm:$0xff]  ;;  %v550_v9 = vld [vmem:[%s933_s1 + $0x30] sm:$0xff]  ;;  %v749_v33 = vstv %s208_s25 }
   0x4   :  { %v544_v8 = vld [vmem:[%s933_s1] sm:$0xff]  ;;  %v545_v10 = vld [vmem:[%s933_s1 + $0x8] sm:$0xff]  ;;  %v551_v11 = vld [vmem:[%s933_s1 + $0x38] sm:$0xff] }
   0x5   :  { %v546_v12 = vld [vmem:[%s933_s1 + $0x10] sm:$0xff]  ;;  %v547_v13 = vld [vmem:[%s933_s1 + $0x18] sm:$0xff]  ;;  %v271_v16 = vld [vmem:[%s934_s4 + $0x68] sm:$0xff] }
   0x6   :  { %160 = vmatpush.bf16.msra.mxu0 %v558_v1  ;;  %561 = vmatpush.bf16.msra.mxu3 %v558_v1  ;;  %v273_v14 = vld [vmem:[%s934_s4 + $0x78] sm:$0xff]  ;;  %v272_v15 = vld [vmem:[%s934_s4 + $0x70] sm:$0xff]  ;;  %v270_v17 = vld [vmem:[%s934_s4 + $0x60] sm:$0xff] }
   0x7   :  { %278 = vmatpush.msra.mxu1 %v273_v14  ;;  %v269_v18 = vld [vmem:[%s934_s4 + $0x58] sm:$0xff]  ;;  %v268_v19 = vld [vmem:[%s934_s4 + $0x50] sm:$0xff]  ;;  %v267_v20 = vld [vmem:[%s934_s4 + $0x48] sm:$0xff] }
   0x8   :  { %v548_v21 = vld [vmem:[%s933_s1 + $0x20] sm:$0xff]  ;;  %v265_v23 = vld [vmem:[%s934_s4 + $0x38] sm:$0xff]  ;;  %v264_v24 = vld [vmem:[%s934_s4 + $0x30] sm:$0xff] }
   0x9   :  { %279 = vmatpush.msra.mxu1 %v272_v15  ;;  %v266_v22 = vld [vmem:[%s934_s4 + $0x40] sm:$0xff]  ;;  %v263_v25 = vld [vmem:[%s934_s4 + $0x28] sm:$0xff]  ;;  %v261_v27 = vld [vmem:[%s934_s4 + $0x18] sm:$0xff] }
   0xa   :  { %161 = vmatpush.bf16.msra.mxu0 %v557_v2  ;;  %562 = vmatpush.bf16.msra.mxu3 %v557_v2  ;;  %v262_v26 = vld [vmem:[%s934_s4 + $0x20] sm:$0xff]  ;;  %v260_v28 = vld [vmem:[%s934_s4 + $0x10] sm:$0xff]  ;;  %v549_v29 = vld [vmem:[%s933_s1 + $0x28] sm:$0xff] }
   0xb   :  { %280 = vmatpush.msra.mxu1 %v271_v16  ;;  %v259_v30 = vld [vmem:[%s934_s4 + $0x8] sm:$0xff]  ;;  %v258_v31 = vld [vmem:[%s934_s4] sm:$0xff]  ;;  %v211_v41 = vld [vmem:[%s937_s3 + $0x10] sm:$0xff] }
   0xc   :  { %v209_v32 = vld [vmem:[%s937_s3] sm:$0xff]  ;;  %v210_v37 = vld [vmem:[%s937_s3 + $0x8] sm:$0xff]  ;;  %v228_v42 = vmul.f32 %v749_v33, %v211_v41  ;;  %v212_v48 = vld [vmem:[%s937_s3 + $0x18] sm:$0xff] }
   0xd   :  { %281 = vmatpush.msra.mxu1 %v270_v17  ;;  %v226_v34 = vmul.f32 %v749_v33, %v209_v32  ;;  %v227_v38 = vmul.f32 %v749_v33, %v210_v37  ;;  %v221_v44 = vld [vmem:[%s937_s3 + $0x60] sm:$0xff]  ;;  %v229_v50 = vmul.f32 %v749_v33, %v212_v48  ;;  %v222_v52 = vld [vmem:[%s937_s3 + $0x68] sm:$0xff]  ;;  %v223_v60 = vld [vmem:[%s937_s3 + $0x70] sm:$0xff] }
   0xe   :  { %162 = vmatpush.bf16.msra.mxu0 %v556_v3  ;;  %563 = vmatpush.bf16.msra.mxu3 %v556_v3  ;;  %v238_v47 = vmul.f32 %v749_v33, %v221_v44  ;;  %v239_v55 = vmul.f32 %v749_v33, %v222_v52  ;;  %v213_v56 = vld [vmem:[%s937_s3 + $0x20] sm:$0xff]  ;;  %v240_v63 = vmul.f32 %v749_v33, %v223_v60  ;;  %v214_v0 = vld [vmem:[%s937_s3 + $0x28] sm:$0xff] }
   0xf   :  { %282 = vmatpush.msra.mxu1 %v269_v18  ;;  %v230_v58 = vmul.f32 %v749_v33, %v213_v56  ;;  %v231_v2 = vmul.f32 %v749_v33, %v214_v0  ;;  %v360_v48 = vld [vmem:[%s938_s6 + $0x8] sm:$0xff] }
  0x11   :  { %283 = vmatpush.msra.mxu1 %v268_v19 }
  0x12   :  { %163 = vmatpush.bf16.msra.mxu0 %v555_v4  ;;  %564 = vmatpush.bf16.msra.mxu3 %v555_v4  ;;  %v224_v4 = vld [vmem:[%s937_s3 + $0x78] sm:$0xff] }
  0x13   :  { %284 = vmatpush.msra.mxu1 %v267_v20 }
  0x15   :  { %285 = vmatpush.msra.mxu1 %v266_v22 }
  0x16   :  { %164 = vmatpush.bf16.msra.mxu0 %v554_v5  ;;  %565 = vmatpush.bf16.msra.mxu3 %v554_v5 }
  0x17   :  { %286 = vmatpush.msra.mxu1 %v265_v23 }
  0x19   :  { %287 = vmatpush.msra.mxu1 %v264_v24 }
  0x1a   :  { %165 = vmatpush.bf16.msra.mxu0 %v553_v6  ;;  %566 = vmatpush.bf16.msra.mxu3 %v553_v6 }
  0x1b   :  { %288 = vmatpush.msra.mxu1 %v263_v25 }
  0x1d   :  { %289 = vmatpush.msra.mxu1 %v262_v26 }
  0x1e   :  { %166 = vmatpush.bf16.msra.mxu0 %v552_v7  ;;  %567 = vmatpush.bf16.msra.mxu3 %v552_v7  ;;  %v241_v7 = vmul.f32 %v749_v33, %v224_v4 }
  0x1f   :  { %290 = vmatpush.msra.mxu1 %v261_v27 }
  0x21   :  { %167 = vmatmul.bf16.vlgmr.msra.gmra.mxu0 %v544_v8  ;;  %197 = vmatmul.bf16.vlgmr.msra.gmra.mxu3 %v550_v9  ;;  %v215_v8 = vld [vmem:[%s937_s3 + $0x30] sm:$0xff] }
  0x22   :  { %568 = vmatpush.msrb.mxu3 %v273_v14  ;;  %291 = vmatpush.msra.mxu1 %v260_v28 }
  0x24   :  { %569 = vmatpush.msrb.mxu3 %v272_v15  ;;  %292 = vmatpush.msra.mxu1 %v259_v30 }
  0x26   :  { %570 = vmatpush.msrb.mxu3 %v271_v16  ;;  %293 = vmatpush.msra.mxu1 %v258_v31 }
  0x28   :  { %571 = vmatpush.msrb.mxu3 %v270_v17  ;;  %v217_v17 = vld [vmem:[%s937_s3 + $0x40] sm:$0xff] }
  0x2a   :  { %572 = vmatpush.msrb.mxu3 %v269_v18  ;;  %v374_v18 = vld [vmem:[%s938_s6 + $0x78] sm:$0xff] }
  0x2b   :  { %379 = vmatpush.msra.mxu2 %v374_v18 }
  0x2c   :  { %573 = vmatpush.msrb.mxu3 %v268_v19  ;;  %v373_v19 = vld [vmem:[%s938_s6 + $0x70] sm:$0xff] }
  0x2d   :  { %380 = vmatpush.msra.mxu2 %v373_v19 }
  0x2e   :  { %574 = vmatpush.msrb.mxu3 %v267_v20  ;;  %v234_v20 = vmul.f32 %v749_v33, %v217_v17 }
  0x30   :  { %575 = vmatpush.msrb.mxu3 %v266_v22  ;;  %v371_v22 = vld [vmem:[%s938_s6 + $0x60] sm:$0xff] }
  0x31   :  { %172 = vmatmul.bf16.gmra.mxu0 %v545_v10  ;;  %202 = vmatmul.bf16.gmra.mxu3 %v551_v11  ;;  %v232_v10 = vmul.f32 %v749_v33, %v215_v8 }
  0x32   :  { %576 = vmatpush.msrb.mxu3 %v265_v23 }
  0x34   :  { %577 = vmatpush.msrb.mxu3 %v264_v24 }
  0x36   :  { %578 = vmatpush.msrb.mxu3 %v263_v25  ;;  %v370_v25 = vld [vmem:[%s938_s6 + $0x58] sm:$0xff] }
  0x38   :  { %579 = vmatpush.msrb.mxu3 %v262_v26  ;;  %v218_v26 = vld [vmem:[%s937_s3 + $0x48] sm:$0xff] }
  0x3a   :  { %580 = vmatpush.msrb.mxu3 %v261_v27  ;;  %v369_v27 = vld [vmem:[%s938_s6 + $0x50] sm:$0xff] }
  0x3c   :  { %581 = vmatpush.msrb.mxu3 %v260_v28  ;;  %v235_v28 = vmul.f32 %v749_v33, %v218_v26 }
  0x3e   :  { %582 = vmatpush.msrb.mxu3 %v259_v30  ;;  %v367_v30 = vld [vmem:[%s938_s6 + $0x40] sm:$0xff] }
  0x40   :  { %583 = vmatpush.msrb.mxu3 %v258_v31 }
  0x41   :  { %177 = vmatmul.bf16.gmra.mxu0 %v546_v12 }
  0x42   :  { %584 = vmatpush.msra.mxu3 %v374_v18 }
  0x44   :  { %585 = vmatpush.msra.mxu3 %v373_v19 }
  0x51   :  { %182 = vmatmul.bf16.gmra.mxu0 %v547_v13  ;;  %v216_v13 = vld [vmem:[%s937_s3 + $0x38] sm:$0xff] }
  0x52   :  { %v233_v14 = vmul.f32 %v749_v33, %v216_v13 }
  0x61   :  { %187 = vmatmul.bf16.gmra.mxu0 %v548_v21  ;;  %v372_v21 = vld [vmem:[%s938_s6 + $0x68] sm:$0xff] }
  0x62   :  { %381 = vmatpush.msra.mxu2 %v372_v21  ;;  %586 = vmatpush.msra.mxu3 %v372_v21 }
  0x64   :  { %382 = vmatpush.msra.mxu2 %v371_v22  ;;  %587 = vmatpush.msra.mxu3 %v371_v22 }
  0x66   :  { %383 = vmatpush.msra.mxu2 %v370_v25  ;;  %588 = vmatpush.msra.mxu3 %v370_v25 }
  0x68   :  { %384 = vmatpush.msra.mxu2 %v369_v27  ;;  %589 = vmatpush.msra.mxu3 %v369_v27 }
  0x71   :  { %192 = vmatmul.bf16.gmra.mxu0 %v549_v29  ;;  %v368_v29 = vld [vmem:[%s938_s6 + $0x48] sm:$0xff] }
  0x72   :  { %385 = vmatpush.msra.mxu2 %v368_v29  ;;  %590 = vmatpush.msra.mxu3 %v368_v29 }
  0x74   :  { %386 = vmatpush.msra.mxu2 %v367_v30  ;;  %591 = vmatpush.msra.mxu3 %v367_v30 }
  0x9e   :  { %v168_v35 = vpop.f32.mrf.mxu0 }
  0x9f   :  { %v242_v36 = vadd.f32 %v226_v34, %v168_v35  ;;  %v366_v34 = vld [vmem:[%s938_s6 + $0x38] sm:$0xff]  ;;  %v219_v35 = vld [vmem:[%s937_s3 + $0x50] sm:$0xff] }
  0xa0   :  { %387 = vmatpush.msra.mxu2 %v366_v34  ;;  %592 = vmatpush.msra.mxu3 %v366_v34  ;;  %v236_v37 = vmul.f32 %v749_v33, %v219_v35  ;;  %v866_v35 = vld [vmem:[%s939_s7] ss:$0 sm:$0xff] }
  0xa1   :  { %294 = vmatmul.f32.vlgmr.msra.gmra.mxu1 %v242_v36  ;;  %v365_v36 = vld [vmem:[%s938_s6 + $0x30] sm:$0xff] }
  0xa2   :  { %388 = vmatpush.msra.mxu2 %v365_v36  ;;  %593 = vmatpush.msra.mxu3 %v365_v36 }
  0xa4   :  { %v198_v46 = vpop.f32.mrf.mxu3 }
  0xa5   :  { %v254_v49 = vadd.f32 %v238_v47, %v198_v46  ;;  %v361_v47 = vld [vmem:[%s938_s6 + $0x10] sm:$0xff] }
  0xa6   :  { %v170_v39 = vpop.f32.mrf.mxu0 }
  0xa7   :  { %v243_v40 = vadd.f32 %v227_v38, %v170_v39  ;;  %330 = vmatmul.f32.vlgmr.msrb.gmra.mxu3 %v254_v49  ;;  %v364_v38 = vld [vmem:[%s938_s6 + $0x28] sm:$0xff]  ;;  %v363_v39 = vld [vmem:[%s938_s6 + $0x20] sm:$0xff] }
  0xa8   :  { %389 = vmatpush.msra.mxu2 %v364_v38  ;;  %594 = vmatpush.msra.mxu3 %v364_v38  ;;  %v359_v49 = vld [vmem:[%s938_s6] sm:$0xff] }
  0xa9   :  { %297 = vmatmul.f32.gmra.mxu1 %v243_v40 }
  0xaa   :  { %390 = vmatpush.msra.mxu2 %v363_v39  ;;  %595 = vmatpush.msra.mxu3 %v363_v39 }
  0xac   :  { %v200_v54 = vpop.f32.mrf.mxu3 }
  0xad   :  { %v255_v57 = vadd.f32 %v239_v55, %v200_v54 }
  0xae   :  { %v173_v43 = vpop.f32.mrf.mxu0 }
  0xaf   :  { %v244_v45 = vadd.f32 %v228_v42, %v173_v43  ;;  %333 = vmatmul.f32.gmra.mxu3 %v255_v57  ;;  %v362_v42 = vld [vmem:[%s938_s6 + $0x18] sm:$0xff] }
  0xb0   :  { %v220_v43 = vld [vmem:[%s937_s3 + $0x58] sm:$0xff]  ;;  %391 = vmatpush.msra.mxu2 %v362_v42  ;;  %596 = vmatpush.msra.mxu3 %v362_v42 }
  0xb1   :  { %300 = vmatmul.f32.gmra.mxu1 %v244_v45  ;;  %v237_v44 = vmul.f32 %v749_v33, %v220_v43  ;;  %v600_v33 = vld [vmem:[%s935_s5] ss:$0 sm:$0xff] }
  0xb2   :  { %392 = vmatpush.msra.mxu2 %v361_v47  ;;  %597 = vmatpush.msra.mxu3 %v361_v47 }
  0xb4   :  { %v203_v62 = vpop.f32.mrf.mxu3  ;;  %393 = vmatpush.msra.mxu2 %v360_v48  ;;  %598 = vmatpush.msra.mxu3 %v360_v48 }
  0xb5   :  { %v256_v1 = vadd.f32 %v240_v63, %v203_v62 }
  0xb6   :  { %v175_v51 = vpop.f32.mrf.mxu0  ;;  %394 = vmatpush.msra.mxu2 %v359_v49  ;;  %599 = vmatpush.msra.mxu3 %v359_v49 }
  0xb7   :  { %v245_v53 = vadd.f32 %v229_v50, %v175_v51  ;;  %336 = vmatmul.f32.gmra.mxu3 %v256_v1 }
  0xb9   :  { %303 = vmatmul.f32.gmra.mxu1 %v245_v53 }
  0xbc   :  { %v205_v6 = vpop.f32.mrf.mxu3 }
  0xbd   :  { %v257_v9 = vadd.f32 %v241_v7, %v205_v6 }
  0xbe   :  { %v178_v59 = vpop.f32.mrf.mxu0 }
  0xbf   :  { %v246_v61 = vadd.f32 %v230_v58, %v178_v59  ;;  %339 = vmatmul.f32.gmra.mxu3 %v257_v9 }
  0xc1   :  { %306 = vmatmul.f32.gmra.mxu1 %v246_v61 }
  0xc6   :  { %v180_v3 = vpop.f32.mrf.mxu0 }
  0xc7   :  { %v247_v5 = vadd.f32 %v231_v2, %v180_v3 }
  0xc9   :  { %309 = vmatmul.f32.gmra.mxu1 %v247_v5 }
  0xce   :  { %v183_v11 = vpop.f32.mrf.mxu0 }
  0xcf   :  { %v248_v12 = vadd.f32 %v232_v10, %v183_v11 }
  0xd1   :  { %312 = vmatmul.f32.gmra.mxu1 %v248_v12 }
  0xd6   :  { %v185_v15 = vpop.f32.mrf.mxu0 }
  0xd7   :  { %v249_v16 = vadd.f32 %v233_v14, %v185_v15 }
  0xd9   :  { %315 = vmatmul.f32.gmra.mxu1 %v249_v16 }
  0xde   :  { %v188_v23 = vpop.f32.mrf.mxu0 }
  0xdf   :  { %v250_v24 = vadd.f32 %v234_v20, %v188_v23 }
  0xe1   :  { %318 = vmatmul.f32.gmra.mxu1 %v250_v24 }
  0xe6   :  { %v190_v31 = vpop.f32.mrf.mxu0 }
  0xe7   :  { %v251_v32 = vadd.f32 %v235_v28, %v190_v31 }
  0xe9   :  { %321 = vmatmul.f32.gmra.mxu1 %v251_v32 }
  0xee   :  { %v193_v40 = vpop.f32.mrf.mxu0 }
  0xef   :  { %v252_v41 = vadd.f32 %v236_v37, %v193_v40 }
  0xf1   :  { %324 = vmatmul.f32.gmra.mxu1 %v252_v41 }
  0xf6   :  { %v195_v45 = vpop.f32.mrf.mxu0 }
  0xf7   :  { %v253_v46 = vadd.f32 %v237_v44, %v195_v45 }
  0xf9   :  { %327 = vmatmul.f32.gmra.mxu1 %v253_v46 }
 0x11e   :  { %v295_v50 = vpop.f32.mrf.mxu1 }
 0x11f   :  { %v296_v51 = vadd.f32 %v600_v33, %v295_v50 }
 0x121   :  { %v343_v52 = vmax.f32 %v296_v51, 0.0 }
 0x123   :  { %395 = vmatmul.f32.vlgmr.msra.gmra.mxu2 %v343_v52 }
 0x126   :  { %v298_v53 = vpop.f32.mrf.mxu1 }
 0x127   :  { %v299_v54 = vadd.f32 %v600_v33, %v298_v53 }
 0x129   :  { %v344_v55 = vmax.f32 %v299_v54, 0.0 }
 0x12a   :  { %v331_v60 = vpop.f32.mrf.mxu3 }
 0x12b   :  { %398 = vmatmul.f32.gmra.mxu2 %v344_v55  ;;  %v332_v62 = vadd.f32 %v600_v33, %v331_v60 }
 0x12d   :  { %v355_v0 = vmax.f32 %v332_v62, 0.0 }
 0x12e   :  { %v301_v56 = vpop.f32.mrf.mxu1 }
 0x12f   :  { %v302_v57 = vadd.f32 %v600_v33, %v301_v56  ;;  %431 = vmatmul.f32.vlgmr.msra.gmra.mxu3 %v355_v0 }
 0x131   :  { %v345_v58 = vmax.f32 %v302_v57, 0.0 }
 0x132   :  { %v334_v2 = vpop.f32.mrf.mxu3 }
 0x133   :  { %401 = vmatmul.f32.gmra.mxu2 %v345_v58  ;;  %v335_v4 = vadd.f32 %v600_v33, %v334_v2 }
 0x135   :  { %v356_v6 = vmax.f32 %v335_v4, 0.0 }
 0x136   :  { %v304_v59 = vpop.f32.mrf.mxu1 }
 0x137   :  { %v305_v61 = vadd.f32 %v600_v33, %v304_v59  ;;  %434 = vmatmul.f32.gmra.mxu3 %v356_v6 }
 0x139   :  { %v346_v63 = vmax.f32 %v305_v61, 0.0 }
 0x13a   :  { %v337_v8 = vpop.f32.mrf.mxu3 }
 0x13b   :  { %404 = vmatmul.f32.gmra.mxu2 %v346_v63  ;;  %v338_v10 = vadd.f32 %v600_v33, %v337_v8 }
 0x13d   :  { %v357_v12 = vmax.f32 %v338_v10, 0.0 }
 0x13e   :  { %v307_v1 = vpop.f32.mrf.mxu1 }
 0x13f   :  { %v308_v3 = vadd.f32 %v600_v33, %v307_v1  ;;  %437 = vmatmul.f32.gmra.mxu3 %v357_v12 }
 0x141   :  { %v347_v5 = vmax.f32 %v308_v3, 0.0 }
 0x142   :  { %v340_v14 = vpop.f32.mrf.mxu3 }
 0x143   :  { %407 = vmatmul.f32.gmra.mxu2 %v347_v5  ;;  %v341_v16 = vadd.f32 %v600_v33, %v340_v14 }
 0x145   :  { %v358_v18 = vmax.f32 %v341_v16, 0.0 }
 0x146   :  { %v310_v7 = vpop.f32.mrf.mxu1 }
 0x147   :  { %v311_v9 = vadd.f32 %v600_v33, %v310_v7  ;;  %440 = vmatmul.f32.gmra.mxu3 %v358_v18 }
 0x149   :  { %v348_v11 = vmax.f32 %v311_v9, 0.0 }
 0x14b   :  { %410 = vmatmul.f32.gmra.mxu2 %v348_v11 }
 0x14e   :  { %v313_v13 = vpop.f32.mrf.mxu1 }
 0x14f   :  { %v314_v15 = vadd.f32 %v600_v33, %v313_v13 }
 0x151   :  { %v349_v17 = vmax.f32 %v314_v15, 0.0 }
 0x153   :  { %413 = vmatmul.f32.gmra.mxu2 %v349_v17 }
 0x156   :  { %v316_v19 = vpop.f32.mrf.mxu1 }
 0x157   :  { %v317_v20 = vadd.f32 %v600_v33, %v316_v19 }
 0x159   :  { %v350_v21 = vmax.f32 %v317_v20, 0.0 }
 0x15b   :  { %416 = vmatmul.f32.gmra.mxu2 %v350_v21 }
 0x15e   :  { %v319_v22 = vpop.f32.mrf.mxu1 }
 0x15f   :  { %v320_v23 = vadd.f32 %v600_v33, %v319_v22 }
 0x161   :  { %v351_v24 = vmax.f32 %v320_v23, 0.0 }
 0x163   :  { %419 = vmatmul.f32.gmra.mxu2 %v351_v24 }
 0x166   :  { %v322_v25 = vpop.f32.mrf.mxu1 }
 0x167   :  { %v323_v26 = vadd.f32 %v600_v33, %v322_v25 }
 0x169   :  { %v352_v27 = vmax.f32 %v323_v26, 0.0 }
 0x16b   :  { %422 = vmatmul.f32.gmra.mxu2 %v352_v27 }
 0x16e   :  { %v325_v28 = vpop.f32.mrf.mxu1 }
 0x16f   :  { %v326_v29 = vadd.f32 %v600_v33, %v325_v28 }
 0x171   :  { %v353_v30 = vmax.f32 %v326_v29, 0.0 }
 0x173   :  { %425 = vmatmul.f32.gmra.mxu2 %v353_v30 }
 0x176   :  { %v328_v31 = vpop.f32.mrf.mxu1 }
 0x177   :  { %v329_v32 = vadd.f32 %v600_v33, %v328_v31 }
 0x179   :  { %v354_v34 = vmax.f32 %v329_v32, 0.0 }
 0x17b   :  { %428 = vmatmul.f32.gmra.mxu2 %v354_v34 }
 0x1a6   :  { %v396_v36 = vpop.f32.mrf.mxu2 }
 0x1a7   :  { %v397_v37 = vadd.f32 %v866_v35, %v396_v36 }
 0x1a9   :  { %v444_v38 = vmax.f32 %v397_v37, 0.0 }
 0x1ab   :  { %460 = vst [vmem:[%s940_s8] sm:$0xff] %v444_v38 }
 0x1ae   :  { %v399_v39 = vpop.f32.mrf.mxu2 }
 0x1af   :  { %v400_v40 = vadd.f32 %v866_v35, %v399_v39 }
 0x1b1   :  { %v445_v41 = vmax.f32 %v400_v40, 0.0 }
 0x1b2   :  { %v432_v46 = vpop.f32.mrf.mxu3 }
 0x1b3   :  { %461 = vst [vmem:[%s940_s8 + $0x8] sm:$0xff] %v445_v41  ;;  %v433_v49 = vadd.f32 %v866_v35, %v432_v46 }
 0x1b5   :  { %v456_v33 = vmax.f32 %v433_v49, 0.0 }
 0x1b6   :  { %v402_v42 = vpop.f32.mrf.mxu2 }
 0x1b7   :  { %v403_v43 = vadd.f32 %v866_v35, %v402_v42  ;;  %472 = vst [vmem:[%s940_s8 + $0x60] sm:$0xff] %v456_v33 }
 0x1b9   :  { %v446_v44 = vmax.f32 %v403_v43, 0.0 }
 0x1ba   :  { %v435_v51 = vpop.f32.mrf.mxu3 }
 0x1bb   :  { %462 = vst [vmem:[%s940_s8 + $0x10] sm:$0xff] %v446_v44  ;;  %v436_v53 = vadd.f32 %v866_v35, %v435_v51 }
 0x1bd   :  { %v457_v55 = vmax.f32 %v436_v53, 0.0 }
 0x1be   :  { %v405_v45 = vpop.f32.mrf.mxu2 }
 0x1bf   :  { %v406_v47 = vadd.f32 %v866_v35, %v405_v45  ;;  %473 = vst [vmem:[%s940_s8 + $0x68] sm:$0xff] %v457_v55 }
 0x1c1   :  { %v447_v48 = vmax.f32 %v406_v47, 0.0 }
 0x1c2   :  { %v438_v57 = vpop.f32.mrf.mxu3 }
 0x1c3   :  { %463 = vst [vmem:[%s940_s8 + $0x18] sm:$0xff] %v447_v48  ;;  %v439_v60 = vadd.f32 %v866_v35, %v438_v57 }
 0x1c5   :  { %v458_v61 = vmax.f32 %v439_v60, 0.0 }
 0x1c6   :  { %v408_v50 = vpop.f32.mrf.mxu2 }
 0x1c7   :  { %v409_v52 = vadd.f32 %v866_v35, %v408_v50  ;;  %474 = vst [vmem:[%s940_s8 + $0x70] sm:$0xff] %v458_v61 }
 0x1c9   :  { %v448_v54 = vmax.f32 %v409_v52, 0.0 }
 0x1ca   :  { %v441_v63 = vpop.f32.mrf.mxu3 }
 0x1cb   :  { %464 = vst [vmem:[%s940_s8 + $0x20] sm:$0xff] %v448_v54  ;;  %v442_v1 = vadd.f32 %v866_v35, %v441_v63 }
 0x1cd   :  { %v459_v3 = vmax.f32 %v442_v1, 0.0 }
 0x1ce   :  { %v411_v56 = vpop.f32.mrf.mxu2 }
 0x1cf   :  { %v412_v58 = vadd.f32 %v866_v35, %v411_v56  ;;  %475 = vst [vmem:[%s940_s8 + $0x78] sm:$0xff] %v459_v3 }
 0x1d1   :  { %v449_v59 = vmax.f32 %v412_v58, 0.0 }
 0x1d3   :  { %465 = vst [vmem:[%s940_s8 + $0x28] sm:$0xff] %v449_v59 }
 0x1d6   :  { %v414_v62 = vpop.f32.mrf.mxu2 }
 0x1d7   :  { %v415_v0 = vadd.f32 %v866_v35, %v414_v62 }
 0x1d9   :  { %v450_v2 = vmax.f32 %v415_v0, 0.0 }
 0x1db   :  { %466 = vst [vmem:[%s940_s8 + $0x30] sm:$0xff] %v450_v2 }
 0x1de   :  { %v417_v4 = vpop.f32.mrf.mxu2 }
 0x1df   :  { %v418_v5 = vadd.f32 %v866_v35, %v417_v4 }
 0x1e1   :  { %v451_v6 = vmax.f32 %v418_v5, 0.0 }
 0x1e3   :  { %467 = vst [vmem:[%s940_s8 + $0x38] sm:$0xff] %v451_v6 }
 0x1e6   :  { %v420_v7 = vpop.f32.mrf.mxu2 }
 0x1e7   :  { %v421_v8 = vadd.f32 %v866_v35, %v420_v7 }
 0x1e9   :  { %v452_v9 = vmax.f32 %v421_v8, 0.0 }
 0x1eb   :  { %468 = vst [vmem:[%s940_s8 + $0x40] sm:$0xff] %v452_v9 }
 0x1ee   :  { %v423_v10 = vpop.f32.mrf.mxu2 }
 0x1ef   :  { %v424_v11 = vadd.f32 %v866_v35, %v423_v10 }
 0x1f1   :  { %v453_v12 = vmax.f32 %v424_v11, 0.0 }
 0x1f3   :  { %469 = vst [vmem:[%s940_s8 + $0x48] sm:$0xff] %v453_v12 }
 0x1f6   :  { %v426_v13 = vpop.f32.mrf.mxu2 }
 0x1f7   :  { %v427_v14 = vadd.f32 %v866_v35, %v426_v13 }
 0x1f9   :  { %v454_v15 = vmax.f32 %v427_v14, 0.0 }
 0x1fb   :  { %470 = vst [vmem:[%s940_s8 + $0x50] sm:$0xff] %v454_v15 }
 0x1fe   :  { %v429_v16 = vpop.f32.mrf.mxu2 }
 0x1ff   :  { %v430_v17 = vadd.f32 %v866_v35, %v429_v16 }
 0x201   :  { %v455_v18 = vmax.f32 %v430_v17, 0.0 }
 0x203   :  { %471 = vst [vmem:[%s940_s8 + $0x58] sm:$0xff] %v455_v18 }

</bundles_post_ra>
